<compile_context>
chip_gen: v5e
topology: v5e:2x2
jax: 0.10.0
libtpu: 0.0.40
codegen_flags: <defaults>
</compile_context>

<pallas_src>
import jax
import jax.numpy as jnp
from jax.experimental import pallas as pl
from jax.experimental.pallas import tpu as pltpu

LANES = 128            # vreg lane width
SUBLANES = 8           # vreg sublane count (f32)
# 8192 rows x 128 lanes x 4 B = 4 MiB per f32 buffer: big enough to amortize
# per-grid-step overhead (>=85% of HBM roofline on v5e/v6e/v7x), small enough
# that 2 arrays x 2 pipeline buffers (+headroom) fits every generation's VMEM.
MAX_BLOCK_ROWS = 8192
# Only split into >=2 grid blocks (for v7x's two TensorCores) once the input
# is > ~2 MiB, so each half still amortizes the per-step overhead.
MIN_SPLIT_ROWS = 4096


def _round_up(x, m):
    return -(-x // m) * m


# ----------------------------- kernels --------------------------------------
def _ste_kernel(x_ref, o_ref):
    """(x > 0).float() on one (block_rows, 128) tile — pure VPU compare+select."""
    o_ref[...] = (x_ref[...] > 0).astype(o_ref.dtype)


def _hardtanh_kernel(g_ref, o_ref):
    """Straight-through backward: clamp the incoming gradient to [-1, 1]."""
    o_ref[...] = jnp.clip(g_ref[...], -1.0, 1.0).astype(o_ref.dtype)


# ------------------------- tiling wrapper ------------------------------------
def _tiled_elementwise(kernel, x, out_dtype, donate=False,
                       max_block_rows=MAX_BLOCK_ROWS):
    """Run an elementwise Pallas kernel over x in a lane-dense (rows, 128) layout.

    The input is flattened and given only the tiny (<8*128-element) pad needed
    to form a (rows, 128) slab with rows a multiple of 8.  Block-unaligned row
    counts are handled by a pl.cdiv grid with a ragged last block (no extra
    HBM pad/slice passes).  The pad is inert for both kernels ((0>0)=0,
    clip(0)=0) and discarded anyway.
    """
    orig_shape = x.shape
    flat = x.reshape(-1)
    n = flat.shape[0]

    rows = _round_up(_round_up(n, LANES) // LANES, SUBLANES)   # mult. of 8
    padded_n = rows * LANES
    if padded_n != n:
        flat = jnp.pad(flat, (0, padded_n - n))
    x2d = flat.reshape(rows, LANES)

    # Block size: as large as possible, but split medium inputs into at least
    # two blocks so megacore (v7x 2xTC) sharding of the parallel axis has work.
    block_rows = min(rows, max_block_rows)
    if rows > MIN_SPLIT_ROWS:
        half = _round_up(-(-rows // 2), SUBLANES)
        block_rows = min(block_rows, half)
    num_blocks = pl.cdiv(rows, block_rows)

    in_itemsize = jnp.dtype(x2d.dtype).itemsize
    out_itemsize = jnp.dtype(out_dtype).itemsize
    block_bytes = block_rows * LANES * (in_itemsize + out_itemsize)
    # 2 pipeline buffers per array (in + out) + headroom; well under 64 MiB.
    vmem_limit = min(2 * block_bytes + (4 << 20), 48 << 20)

    aliases = {}
    if donate and jnp.dtype(x2d.dtype) == jnp.dtype(out_dtype):
        aliases = {0: 0}

    out2d = pl.pallas_call(
        kernel,
        out_shape=jax.ShapeDtypeStruct((rows, LANES), out_dtype),
        grid=(num_blocks,),
        in_specs=[pl.BlockSpec((block_rows, LANES), lambda i: (i, 0))],
        out_specs=pl.BlockSpec((block_rows, LANES), lambda i: (i, 0)),
        compiler_params=pltpu.CompilerParams(
            dimension_semantics=("parallel",),
            vmem_limit_bytes=vmem_limit),
        cost_estimate=pl.CostEstimate(
            flops=padded_n, transcendentals=0,
            bytes_accessed=padded_n * (in_itemsize + out_itemsize)),
        input_output_aliases=aliases,
    )(x2d)

    out_flat = out2d.reshape(-1)
    if padded_n != n:
        out_flat = out_flat[:n]
    return out_flat.reshape(orig_shape)


# --------------------- StraightThroughEstimator ------------------------------
@jax.custom_vjp
def straight_through_estimator(x):
    """Forward: (x > 0).float(), elementwise, any shape (output is float32
    to match PyTorch's `.float()` semantics)."""
    return _tiled_elementwise(_ste_kernel, x, jnp.float32)


def _ste_fwd(x):
    # Call the primal implementation directly (don't re-enter the custom_vjp).
    y = _tiled_elementwise(_ste_kernel, x, jnp.float32)
    # 0-d residual carrying x's dtype so bwd emits a matching-dtype gradient.
    return y, jnp.zeros((), x.dtype)


def _ste_bwd(res, g):
    # PyTorch STEFunction.backward: F.hardtanh(grad_output), in x's dtype.
    grad = _tiled_elementwise(_hardtanh_kernel, g, res.dtype, donate=True)
    return (grad,)


straight_through_estimator.defvjp(_ste_fwd, _ste_bwd)


# ------------------------------- test ----------------------------------------
if __name__ == "__main__":
    key = jax.random.PRNGKey(0)
    x = jax.random.normal(key, (2, 4, 16, 16), jnp.float32)

    # forward
    y = jax.block_until_ready(straight_through_estimator(x))
    ref = (x > 0).astype(jnp.float32)
    assert y.shape == x.shape and y.dtype == jnp.float32
    assert jnp.array_equal(y, ref), "forward mismatch"

    # odd, non-lane-aligned shape exercises the tail-pad path
    x_odd = jax.random.normal(jax.random.PRNGKey(1), (3, 7, 5), jnp.float32)
    y_odd = jax.block_until_ready(straight_through_estimator(x_odd))
    assert jnp.array_equal(y_odd, (x_odd > 0).astype(jnp.float32)), "odd-shape mismatch"

    # ragged multi-block path (small block override -> cdiv grid, ragged tail)
    x_rag = jax.random.normal(jax.random.PRNGKey(2), (37, 130), jnp.float32)
    y_rag = jax.block_until_ready(
        _tiled_elementwise(_ste_kernel, x_rag, jnp.float32, max_block_rows=16))
    assert jnp.array_equal(y_rag, (x_rag > 0).astype(jnp.float32)), "ragged mismatch"

    # straight-through backward: d/dx sum(STE(x)) == hardtanh(ones) == ones
    g = jax.block_until_ready(
        jax.grad(lambda a: straight_through_estimator(a).sum())(x))
    assert g.dtype == x.dtype
    assert jnp.array_equal(g, jnp.ones_like(x)), "backward (STE) mismatch"

    # bf16 input: forward still f32 (PyTorch .float()), gradient comes back bf16
    x_bf = jax.random.normal(jax.random.PRNGKey(3), (4, 40), jnp.bfloat16)
    y_bf = jax.block_until_ready(straight_through_estimator(x_bf))
    assert y_bf.dtype == jnp.float32
    g_bf = jax.block_until_ready(
        jax.grad(lambda a: straight_through_estimator(a).sum())(x_bf))
    assert g_bf.dtype == jnp.bfloat16
    assert jnp.array_equal(g_bf, jnp.ones_like(x_bf)), "bf16 backward mismatch"

    print("KERNEL_OK")
</pallas_src>

<mosaic_0001>
module attributes {stable_mosaic.version = 11 : i64} {
  func.func @_ste_kernel(%arg0: i32, %arg1: memref<16x128xf32, #tpu.memory_space<vmem>>, %arg2: memref<16x128xf32, #tpu.memory_space<vmem>>) attributes {dimension_semantics = [#tpu.dimension_semantics<parallel>], iteration_bounds = array<i64: 1>, scalar_prefetch = 0 : i64, scratch_operands = 0 : i64, tpu.core_type = #tpu.core_type<tc>, window_params = [{transform_indices = @transform_0, window_bounds = array<i64: 16, 128>}, {transform_indices = @transform_1, window_bounds = array<i64: 16, 128>}]} {
    %c0 = arith.constant 0 : index
    %c0_0 = arith.constant 0 : index
    %0 = vector.load %arg1[%c0, %c0_0] : memref<16x128xf32, #tpu.memory_space<vmem>>, vector<16x128xf32>
    %cst = arith.constant 0.000000e+00 : f32
    %1 = vector.broadcast %cst : f32 to vector<16x128xf32>
    %2 = arith.cmpf ogt, %0, %1 : vector<16x128xf32>
    %3 = arith.extui %2 : vector<16x128xi1> to vector<16x128xi32>
    %4 = arith.sitofp %3 : vector<16x128xi32> to vector<16x128xf32>
    %c0_1 = arith.constant 0 : index
    %c0_2 = arith.constant 0 : index
    %5 = vector.load %arg2[%c0_1, %c0_2] : memref<16x128xf32, #tpu.memory_space<vmem>>, vector<16x128xf32>
    tpu.vector_store %arg2[%c0_1, %c0_2], %4 {strides = array<i32>} : memref<16x128xf32, #tpu.memory_space<vmem>>, vector<16x128xf32>,
    return
  }
  func.func @transform_0(%arg0: i32) -> (i32, i32) {
    %c0_i32 = arith.constant 0 : i32
    %c0_i32_0 = arith.constant 0 : i32
    return %arg0, %c0_i32 : i32, i32
  }
  func.func @transform_1(%arg0: i32) -> (i32, i32) {
    %c0_i32 = arith.constant 0 : i32
    %c0_i32_0 = arith.constant 0 : i32
    return %arg0, %c0_i32 : i32, i32
  }
}

</mosaic_0001>

<bundles_post_ra>
// kernel: tpu_custom_call.1
= control target key start
LH: loop header
LB: loop body
LE: loop exit
PB: predicated region body
PF: predicated region fallthrough
CT: control target
= control target key end

     0   :  { %6 = vsyncpa [#allocation3], 0  ;;  %s134_s0 = inlined_call_operand.hbm [shape: f32[16,128], index: 0, kind: input, shape index: {}]   ;;  %s135_s1 = inlined_call_operand.hbm [shape: f32[16,128], index: 1, kind: output, shape index: {}]  }
   0x1   :  { %7 = vsyncpa [#allocation4], 0  ;;  %s12_s8 = sshll.u32 %s134_s0, 4  ;;  %s113_s9 = smov [#allocation2]   ;;  %s13_s8 = int_to_ptr.hbm [resolvable:$true] %s12_s8 }
   0x2   :  { %s14_s10 = sshll.u32 %s113_s9, 4  ;;  %s114_s11 = smov 128   ;;  %s15_s10 = int_to_ptr.vmem [resolvable:$true] %s14_s10 }
   0x3   :  { %s115_s12 = smov 8  }
   0x4   :  { %20 = dma.hbm_to_vmem [thread:$0]  %s13_s8, 256, %s15_s10, [#allocation3], %s114_s11, %s114_s11, %s115_s12  }
   0x5   :  { %109 = dma.done.wait [#allocation3], 256  }
   0x6   :  { %110 = vsyncadd [#allocation3], 4294967040  ;;  %s116_s13 = smov [#allocation5]   ;;  %s41_s17 = sshll.u32 %s135_s1, 4  ;;  %v25_v0 = vld [vmem:[#allocation2] sm:$0xff]  ;;  %v26_v1 = vld [vmem:[#allocation2 + $0x8] sm:$0xff]  ;;  %s42_s17 = int_to_ptr.hbm [resolvable:$true] %s41_s17 }
   0x7   :  { %s39_s14 = sshll.u32 %s116_s13, 4  ;;  %vm27_vm0 = vcmp.gt.f32.partialorder %v25_v0, 0.0  ;;  %vm28_vm1 = vcmp.gt.f32.partialorder %v26_v1, 0.0  ;;  %v117_v2 = vmov 0.0   ;;  %s40_s14 = int_to_ptr.vmem [resolvable:$true] %s39_s14 }
   0x8   :  { %v54_v3 = vsel %vm27_vm0, 1.0, %v117_v2  ;;  %v55_v4 = vsel %vm28_vm1, 1.0, %v117_v2 }
   0x9   :  { %33 = vst [vmem:[#allocation5] sm:$0xff] %v54_v3 }
   0xa   :  { %34 = vst [vmem:[#allocation5 + $0x8] sm:$0xff] %v55_v4 }
   0xb   :  { %47 = dma.vmem_to_hbm [thread:$0]  %s40_s14, 256, %s42_s17, [#allocation4], %s114_s11, %s114_s11, %s115_s12  }
   0xc   :  { %111 = dma.done.wait [#allocation4], 256  }
   0xd   :  { %112 = vsyncadd [#allocation4], 4294967040 }
   0xe   :  { %52 = vsyncpa [#allocation3], 1 }
   0xf   :  { %53 = vsyncpa [#allocation4], 1 }

</bundles_post_ra>
